<compile_context>
chip_gen: v7x
topology: tpu7x:2x2x1
jax: 0.10.0
libtpu: 0.0.40
codegen_flags: <defaults>
</compile_context>

<pallas_src>
import jax
import jax.numpy as jnp
from jax.experimental import pallas as pl
from jax.experimental.pallas import tpu as pltpu

# ---- model hyperparameters (small, synthetic) -------------------------------
EMBEDDING_DIM = 32
OUT_CHANNELS = 16
KERNEL_SIZE = 3
PAD = KERNEL_SIZE // 2
SENTENCE_LEN = 16
EMOTIONS_NUM = 8
VOCAB_SIZE = 64
BATCH = 2

BL = BATCH * SENTENCE_LEN          # folded batch*length rows
KV = KERNEL_SIZE * VOCAB_SIZE      # selector lane width


def cnn_kernel(ids_ref, t_ref, bc_ref, wf_ref, bf_ref, o_ref):
    """Whole-batch forward in a single grid step.

    ids_ref: (B*L, K) int32  im2col token ids (k*V + tok, or -1 for padding)
    t_ref  : (K*V, C) bf16   folded  emb @ conv-tap  tables
    bc_ref : (1, C)   f32    conv bias
    wf_ref : (C, NE)  bf16   fc weights (row-major)
    bf_ref : (1, NE)  f32    fc bias
    o_ref  : (B, NE)  f32    logits
    """
    ids = ids_ref[...]                                        # (BL, K)
    col = jax.lax.broadcasted_iota(jnp.int32, (BL, KV), 1)    # (BL, K*V)

    # Multi-hot im2col selector: exactly one 1 per (row, valid tap); padding
    # taps carry the sentinel -1 and never match -> zero contribution.
    hot = col == ids[:, 0:1]
    for k in range(1, KERNEL_SIZE):
        hot = hot | (col == ids[:, k:k + 1])
    sel = hot.astype(jnp.bfloat16)                            # (BL, K*V)

    # embedding-gather + im2col + conv1d == ONE MXU matmul, f32 accumulation.
    conv = jnp.dot(sel, t_ref[...], preferred_element_type=jnp.float32)
    conv = jnp.maximum(conv + bc_ref[...], 0.0)               # bias + ReLU
    # TODO(synk): nn.Dropout is identity at inference; not applied.

    # MaxPool1d(sentence_len) == per-example global max over L (sublane-aligned
    # static slices, XLU reductions).
    pooled = jnp.concatenate(
        [jnp.max(conv[b * SENTENCE_LEN:(b + 1) * SENTENCE_LEN, :],
                 axis=0, keepdims=True)
         for b in range(BATCH)],
        axis=0)                                               # (B, C)

    # Linear head: batch folded into rows -> one small MXU push.
    logits = jnp.dot(pooled.astype(jnp.bfloat16), wf_ref[...],
                     preferred_element_type=jnp.float32) + bf_ref[...]
    o_ref[...] = logits.astype(o_ref.dtype)                   # (B, NE)


@jax.jit
def cnn_forward(texts, embedding, conv_w, conv_b, fc_w, fc_b):
    """texts: (B, L) int32 token ids. Returns (B, EMOTIONS_NUM) float32."""
    B, L = texts.shape
    V, _E = embedding.shape
    C, _, K = conv_w.shape
    NE = fc_w.shape[0]

    # --- tiny weight/index prep, fused by jit (endorsed by the review) -------
    # Folded tables: T[k*V + v, c] = sum_e emb[v, e] * conv_w[c, e, k].
    t_tab = jnp.einsum("ve,cek->kvc", embedding, conv_w).reshape(K * V, C)
    t_tab = t_tab.astype(jnp.bfloat16)
    wf = fc_w.T.astype(jnp.bfloat16)                          # (C, NE)
    bc = conv_b.reshape(1, C)
    bf = fc_b.reshape(1, NE)

    # im2col of token ids: output pos l, tap k reads token at l + k - PAD.
    pos = jnp.arange(L)[:, None] + jnp.arange(K)[None, :] - PAD     # (L, K)
    valid = (pos >= 0) & (pos < L)
    tok = texts[:, jnp.clip(pos, 0, L - 1)]                          # (B, L, K)
    tok = jnp.clip(tok, 0, V - 1)        # OOB-id safety (review concern)
    ids = jnp.where(valid[None], tok + jnp.arange(K)[None, None] * V, -1)
    ids = ids.reshape(B * L, K).astype(jnp.int32)

    return pl.pallas_call(
        cnn_kernel,
        out_shape=jax.ShapeDtypeStruct((B, NE), jnp.float32),
        grid=(1,),
        in_specs=[
            pl.BlockSpec((B * L, K), lambda i: (0, 0)),       # im2col ids
            pl.BlockSpec((K * V, C), lambda i: (0, 0)),       # folded tables
            pl.BlockSpec((1, C), lambda i: (0, 0)),           # conv bias
            pl.BlockSpec((C, NE), lambda i: (0, 0)),          # fc weights
            pl.BlockSpec((1, NE), lambda i: (0, 0)),          # fc bias
        ],
        out_specs=pl.BlockSpec((B, NE), lambda i: (0, 0)),
        compiler_params=pltpu.CompilerParams(
            dimension_semantics=("arbitrary",)),
    )(ids, t_tab, bc, wf, bf)


def ref_forward(texts, embedding, conv_w, conv_b, fc_w, fc_b):
    """Pure-JAX reference mirroring the PyTorch module (NCL layout)."""
    x = jnp.take(embedding, texts, axis=0)                    # (B, L, E)
    x = jnp.transpose(x, (0, 2, 1))                           # (B, E, L)
    y = jax.lax.conv_general_dilated(
        x, conv_w, window_strides=(1,), padding=[(PAD, PAD)],
        dimension_numbers=("NCH", "OIH", "NCH"))
    y = y + conv_b[None, :, None]
    y = jnp.maximum(y, 0.0)
    pooled = jnp.max(y, axis=2)                               # (B, C)
    return pooled @ fc_w.T + fc_b


if __name__ == "__main__":
    key = jax.random.PRNGKey(0)
    k_emb, k_cw, k_cb, k_fw, k_fb, k_txt = jax.random.split(key, 6)

    # Deterministic synthetic parameters (shapes follow the PyTorch __init__).
    embedding = jax.random.normal(k_emb, (VOCAB_SIZE, EMBEDDING_DIM),
                                  jnp.float32) * 0.1
    conv_w = jax.random.normal(
        k_cw, (OUT_CHANNELS, EMBEDDING_DIM, KERNEL_SIZE), jnp.float32) * 0.1
    conv_b = jax.random.normal(k_cb, (OUT_CHANNELS,), jnp.float32) * 0.1
    fc_w = jax.random.normal(
        k_fw, (EMOTIONS_NUM, OUT_CHANNELS), jnp.float32) * 0.1
    fc_b = jax.random.normal(k_fb, (EMOTIONS_NUM,), jnp.float32) * 0.1

    texts = jax.random.randint(k_txt, (BATCH, SENTENCE_LEN), 0, VOCAB_SIZE,
                               dtype=jnp.int32)

    out = jax.block_until_ready(
        cnn_forward(texts, embedding, conv_w, conv_b, fc_w, fc_b))
    ref = ref_forward(texts, embedding, conv_w, conv_b, fc_w, fc_b)

    assert out.shape == (BATCH, EMOTIONS_NUM)
    # bf16 MXU operands -> relaxed tolerance vs the f32 reference (per review).
    assert jnp.allclose(out, ref, atol=2e-2, rtol=2e-2), (out, ref)

    print("KERNEL_OK")
</pallas_src>

<mosaic_0001>
module attributes {stable_mosaic.version = 11 : i64} {
  func.func @cnn_kernel(%arg0: i32, %arg1: memref<32x3xi32, #tpu.memory_space<vmem>>, %arg2: memref<192x16xbf16, #tpu.memory_space<vmem>>, %arg3: memref<1x16xf32, #tpu.memory_space<vmem>>, %arg4: memref<16x8xbf16, #tpu.memory_space<vmem>>, %arg5: memref<1x8xf32, #tpu.memory_space<vmem>>, %arg6: memref<2x8xf32, #tpu.memory_space<vmem>>) attributes {dimension_semantics = [#tpu.dimension_semantics<arbitrary>], iteration_bounds = array<i64: 1>, scalar_prefetch = 0 : i64, scratch_operands = 0 : i64, tpu.core_type = #tpu.core_type<tc>, window_params = [{pipeline_mode = #tpu.pipeline_mode<synchronous>, transform_indices = @transform_0, window_bounds = array<i64: 32, 3>}, {pipeline_mode = #tpu.pipeline_mode<synchronous>, transform_indices = @transform_1, window_bounds = array<i64: 192, 16>}, {pipeline_mode = #tpu.pipeline_mode<synchronous>, transform_indices = @transform_2, window_bounds = array<i64: 1, 16>}, {pipeline_mode = #tpu.pipeline_mode<synchronous>, transform_indices = @transform_3, window_bounds = array<i64: 16, 8>}, {pipeline_mode = #tpu.pipeline_mode<synchronous>, transform_indices = @transform_4, window_bounds = array<i64: 1, 8>}, {pipeline_mode = #tpu.pipeline_mode<synchronous>, transform_indices = @transform_5, window_bounds = array<i64: 2, 8>}]} {
    %c0 = arith.constant 0 : index
    %c0_0 = arith.constant 0 : index
    %0 = vector.load %arg1[%c0, %c0_0] : memref<32x3xi32, #tpu.memory_space<vmem>>, vector<32x3xi32>
    %1 = tpu.iota {dimensions = array<i32: 1>} : vector<32x192xi32>
    %2 = vector.extract_strided_slice %0 {offsets = [0, 0], sizes = [32, 1], strides = [1, 1]} : vector<32x3xi32> to vector<32x1xi32>
    %3 = vector.broadcast %2 : vector<32x1xi32> to vector<32x192xi32>
    %4 = arith.cmpi eq, %1, %3 : vector<32x192xi32>
    %5 = vector.extract_strided_slice %0 {offsets = [0, 1], sizes = [32, 1], strides = [1, 1]} : vector<32x3xi32> to vector<32x1xi32>
    %6 = vector.broadcast %5 : vector<32x1xi32> to vector<32x192xi32>
    %7 = arith.cmpi eq, %1, %6 : vector<32x192xi32>
    %8 = arith.ori %4, %7 : vector<32x192xi1>
    %9 = vector.extract_strided_slice %0 {offsets = [0, 2], sizes = [32, 1], strides = [1, 1]} : vector<32x3xi32> to vector<32x1xi32>
    %10 = vector.broadcast %9 : vector<32x1xi32> to vector<32x192xi32>
    %11 = arith.cmpi eq, %1, %10 : vector<32x192xi32>
    %12 = arith.ori %8, %11 : vector<32x192xi1>
    %13 = arith.extui %12 : vector<32x192xi1> to vector<32x192xi32>
    %14 = arith.sitofp %13 : vector<32x192xi32> to vector<32x192xf32>
    %15 = arith.truncf %14 : vector<32x192xf32> to vector<32x192xbf16>
    %c0_1 = arith.constant 0 : index
    %c0_2 = arith.constant 0 : index
    %16 = vector.load %arg2[%c0_1, %c0_2] : memref<192x16xbf16, #tpu.memory_space<vmem>>, vector<192x16xbf16>
    %cst = arith.constant dense<0.000000e+00> : vector<32x16xf32>
    %17 = tpu.matmul %15, %16, %cst {dimension_numbers = #tpu.dot_dimension_numbers<[1], [0], [0], [1], [0, 0, 1, 1], [], []>} : vector<32x192xbf16>, vector<192x16xbf16>, vector<32x16xf32> -> vector<32x16xf32>
    %c0_3 = arith.constant 0 : index
    %c0_4 = arith.constant 0 : index
    %18 = vector.load %arg3[%c0_3, %c0_4] : memref<1x16xf32, #tpu.memory_space<vmem>>, vector<1x16xf32>
    %19 = vector.broadcast %18 : vector<1x16xf32> to vector<32x16xf32>
    %20 = arith.addf %17, %19 : vector<32x16xf32>
    %cst_5 = arith.constant 0.000000e+00 : f32
    %21 = vector.broadcast %cst_5 : f32 to vector<32x16xf32>
    %22 = arith.maximumf %20, %21 : vector<32x16xf32>
    %23 = vector.extract_strided_slice %22 {offsets = [0, 0], sizes = [16, 16], strides = [1, 1]} : vector<32x16xf32> to vector<16x16xf32>
    %cst_6 = arith.constant dense<0xFF800000> : vector<16xf32>
    %24 = vector.multi_reduction <maximumf>, %23, %cst_6 [0] : vector<16x16xf32> to vector<16xf32>
    %25 = vector.shape_cast %24 : vector<16xf32> to vector<1x16xf32>
    %26 = vector.extract_strided_slice %22 {offsets = [16, 0], sizes = [16, 16], strides = [1, 1]} : vector<32x16xf32> to vector<16x16xf32>
    %cst_7 = arith.constant dense<0xFF800000> : vector<16xf32>
    %27 = vector.multi_reduction <maximumf>, %26, %cst_7 [0] : vector<16x16xf32> to vector<16xf32>
    %28 = vector.shape_cast %27 : vector<16xf32> to vector<1x16xf32>
    %29 = tpu.concatenate %25, %28 in 0 : vector<1x16xf32>, vector<1x16xf32> -> vector<2x16xf32>
    %30 = arith.truncf %29 : vector<2x16xf32> to vector<2x16xbf16>
    %c0_8 = arith.constant 0 : index
    %c0_9 = arith.constant 0 : index
    %31 = vector.load %arg4[%c0_8, %c0_9] : memref<16x8xbf16, #tpu.memory_space<vmem>>, vector<16x8xbf16>
    %cst_10 = arith.constant dense<0.000000e+00> : vector<2x8xf32>
    %32 = tpu.matmul %30, %31, %cst_10 {dimension_numbers = #tpu.dot_dimension_numbers<[1], [0], [0], [1], [0, 0, 1, 1], [], []>} : vector<2x16xbf16>, vector<16x8xbf16>, vector<2x8xf32> -> vector<2x8xf32>
    %c0_11 = arith.constant 0 : index
    %c0_12 = arith.constant 0 : index
    %33 = vector.load %arg5[%c0_11, %c0_12] : memref<1x8xf32, #tpu.memory_space<vmem>>, vector<1x8xf32>
    %34 = vector.broadcast %33 : vector<1x8xf32> to vector<2x8xf32>
    %35 = arith.addf %32, %34 : vector<2x8xf32>
    %c0_13 = arith.constant 0 : index
    %c0_14 = arith.constant 0 : index
    %36 = vector.load %arg6[%c0_13, %c0_14] : memref<2x8xf32, #tpu.memory_space<vmem>>, vector<2x8xf32>
    tpu.vector_store %arg6[%c0_13, %c0_14], %35 {strides = array<i32>} : memref<2x8xf32, #tpu.memory_space<vmem>>, vector<2x8xf32>,
    return
  }
  func.func @transform_0(%arg0: i32) -> (i32, i32) {
    %c0_i32 = arith.constant 0 : i32
    %c0_i32_0 = arith.constant 0 : i32
    %c0_i32_1 = arith.constant 0 : i32
    return %c0_i32, %c0_i32_0 : i32, i32
  }
  func.func @transform_1(%arg0: i32) -> (i32, i32) {
    %c0_i32 = arith.constant 0 : i32
    %c0_i32_0 = arith.constant 0 : i32
    %c0_i32_1 = arith.constant 0 : i32
    return %c0_i32, %c0_i32_0 : i32, i32
  }
  func.func @transform_2(%arg0: i32) -> (i32, i32) {
    %c0_i32 = arith.constant 0 : i32
    %c0_i32_0 = arith.constant 0 : i32
    %c0_i32_1 = arith.constant 0 : i32
    return %c0_i32, %c0_i32_0 : i32, i32
  }
  func.func @transform_3(%arg0: i32) -> (i32, i32) {
    %c0_i32 = arith.constant 0 : i32
    %c0_i32_0 = arith.constant 0 : i32
    %c0_i32_1 = arith.constant 0 : i32
    return %c0_i32, %c0_i32_0 : i32, i32
  }
  func.func @transform_4(%arg0: i32) -> (i32, i32) {
    %c0_i32 = arith.constant 0 : i32
    %c0_i32_0 = arith.constant 0 : i32
    %c0_i32_1 = arith.constant 0 : i32
    return %c0_i32, %c0_i32_0 : i32, i32
  }
  func.func @transform_5(%arg0: i32) -> (i32, i32) {
    %c0_i32 = arith.constant 0 : i32
    %c0_i32_0 = arith.constant 0 : i32
    %c0_i32_1 = arith.constant 0 : i32
    return %c0_i32, %c0_i32_0 : i32, i32
  }
}

</mosaic_0001>

<bundles_post_ra>
// kernel: cnn_forward.1
= control target key start
LH: loop header
LB: loop body
LE: loop exit
PB: predicated region body
PF: predicated region fallthrough
CT: control target
= control target key end

     0   :  { %v474_v1 = vmov 2   ;;  %v475_v2 = vmov 1   ;;  %v476_v5 = vmov 0   ;;  %v477_v11 = vmov 0.0   ;;  %s614_s0 = inlined_call_operand.vmem [shape: s32[32,3], index: 0, kind: input, shape index: {}]   ;;  %s615_s1 = inlined_call_operand.vmem [shape: bf16[192,16], index: 1, kind: input, shape index: {}]   ;;  %s616_s2 = inlined_call_operand.vmem [shape: f32[1,16], index: 2, kind: input, shape index: {}]   ;;  %s617_s3 = inlined_call_operand.vmem [shape: bf16[16,8], index: 3, kind: input, shape index: {}]   ;;  %s618_s4 = inlined_call_operand.vmem [shape: f32[1,8], index: 4, kind: input, shape index: {}]   ;;  %s619_s5 = inlined_call_operand.hbm [shape: f32[2,8], index: 5, kind: output, shape index: {}]  }
   0x1   :  { %v22_v0 = vld [vmem:[%s614_s0] sm:$0xff]  ;;  %430 = vset.pattern.permute.xlu0 %v474_v1  ;;  %429 = vset.pattern.permute.xlu1 %v475_v2  ;;  %v23_v4 = vld [vmem:[%s614_s0 + $0x8] sm:$0xff]  ;;  %v439_v7 = vld [vmem:[%s615_s1 + $0x10] sm:$0xff]  }
   0x2   :  { %78 = vperm.xlu0 %430, %v22_v0   ;;  %50 = vperm.xlu1 %429, %v22_v0   ;;  %v437_v3 = vld [vmem:[%s615_s1] sm:$0xff]   ;;  %v438_v6 = vld [vmem:[%s615_s1 + $0x8] sm:$0xff]   ;;  %v24_v8 = vld [vmem:[%s614_s0 + $0x10] sm:$0xff] }
   0x3   :  { %235 = vmatprep.subr.bf16.mxu0 %v476_v5  ;;  %v25_v9 = vld [vmem:[%s614_s0 + $0x18] sm:$0xff]  ;;  %416 = vmatprep.subr.bf16.mxu1 %v477_v11 }
   0x4   :  { %236 = vmatpush1.bf16.msra.mxu0 %v437_v3  ;;  %v440_v10 = vld [vmem:[%s615_s1 + $0x18] sm:$0xff]  }
   0x5   :  { %237 = vmatprep.subr.bf16.mxu0 %v476_v5 }
   0x6   :  { %431 = vset.pattern.permute.xlu0 %v476_v5  ;;  %53 = vperm.xlu1 %429, %v23_v4  }
   0x7   :  { %30 = vperm.xlu0 %431, %v22_v0  }
   0x8   :  { %238 = vmatpush1.bf16.msra.mxu0 %v438_v6 }
   0x9   :  { %239 = vmatprep.subr.bf16.mxu0 %v476_v5 }
   0xa   :  { %432 = vset.pattern.permute.xlu1 %v474_v1 }
   0xb   :  { %33 = vperm.xlu0 %431, %v23_v4   ;;  %81 = vperm.xlu1 %432, %v23_v4  }
   0xc   :  { %240 = vmatpush1.bf16.msra.mxu0 %v439_v7 }
   0xd   :  { %241 = vmatprep.subr.bf16.mxu0 %v476_v5 }
   0xe   :  { %10 = vsyncpa [#allocation3], 0  ;;  %v441_v12 = vld [vmem:[%s615_s1 + $0x20] sm:$0xff]   ;;  %v442_v13 = vld [vmem:[%s615_s1 + $0x28] sm:$0xff]   ;;  %v26_v20 = vlaneseq  ;;  %v478_v34 = vmov 1.0|1.0  }
   0xf   :  { %433 = vset.pattern.permute.xlu1 %v476_v5  ;;  %39 = vperm.xlu0 %431, %v25_v9   ;;  %v443_v14 = vld [vmem:[%s615_s1 + $0x30] sm:$0xff]   ;;  %v444_v15 = vld [vmem:[%s615_s1 + $0x38] sm:$0xff]   ;;  %v445_v16 = vld [vmem:[%s615_s1 + $0x40] sm:$0xff]   ;;  %s480_s27 = smov [#allocation2]  }
  0x10   :  { %36 = vperm.xlu1 %433, %v24_v8   ;;  %242 = vmatpush1.bf16.msra.mxu0 %v440_v10  ;;  %v446_v17 = vld [vmem:[%s615_s1 + $0x48] sm:$0xff]   ;;  %v447_v18 = vld [vmem:[%s615_s1 + $0x50] sm:$0xff]   ;;  %v448_v19 = vld [vmem:[%s615_s1 + $0x58] sm:$0xff]   ;;  %v560_v21 = vand.u32 127, %v26_v20  ;;  %s376_s28 = sshll.u32 %s480_s27, 4  ;;  %s377_s28 = int_to_ptr.vmem [resolvable:$true] %s376_s28 }
  0x11   :  { %243 = vmatprep.subr.bf16.mxu0 %v476_v5  ;;  %v449_v43 = vld [vmem:[%s617_s3] sm:$0xff]   ;;  %s450_s29 = scalar_lea.vmem %s377_s28, 32  ;;  %p455_p1 = scmp.lt.s32.totalorder %s377_s28, %s377_s28 }
  0x12   :  { %v28_v24 = vadd.s32 128, %v560_v21  ;;  %417 = vmatpush3.bf16.msra.mxu1 %v449_v43  ;;  %v392_v44 = vld [vmem:[%s616_s2] ss:$0 sm:$0xff]  ;;  %p451_p0 = scmp.ne.s32.totalorder %s377_s28, %s450_s29  ;;  %p456_p2 = scmp.lt.s32.totalorder %s450_s29, %s450_s29 }
  0x13   :  { %435 = vset.pattern.permute.xlu0 %v474_v1 }
  0x14   :  { %434 = vset.pattern.permute.xlu1 %v475_v2  ;;  %84 = vperm.xlu0 %435, %v24_v8   ;;  %p457_p3 = por %p456_p2, %p455_p1 }
  0x15   :  { %56 = vperm.xlu1 %434, %v24_v8   ;;  %244 = vmatpush1.bf16.msra.mxu0 %v441_v12 }
  0x16   :  { %245 = vmatprep.subr.bf16.mxu0 %v476_v5  ;;  %p458_p4 = pnand %p457_p3, %p451_p0 }
  0x19   :  { %59 = vperm.xlu1 %434, %v25_v9   ;;  %246 = vmatpush1.bf16.msra.mxu0 %v442_v13 }
  0x1a   :  { %247 = vmatprep.subr.bf16.mxu0 %v476_v5 }
  0x1d   :  { %436 = vset.pattern.permute.xlu1 %v474_v1  ;;  %248 = vmatpush1.bf16.msra.mxu0 %v443_v14 }
  0x1e   :  { %87 = vperm.xlu1 %436, %v25_v9   ;;  %249 = vmatprep.subr.bf16.mxu0 %v476_v5 }
  0x21   :  { %250 = vmatpush1.bf16.msra.mxu0 %v444_v15 }
  0x22   :  { %251 = vmatprep.subr.bf16.mxu0 %v476_v5 }
  0x25   :  { %252 = vmatpush1.bf16.msra.mxu0 %v445_v16 }
  0x26   :  { %253 = vmatprep.subr.bf16.mxu0 %v476_v5 }
  0x29   :  { %254 = vmatpush1.bf16.msra.mxu0 %v446_v17  ;;  %v411_v17 = vld [vmem:[%s618_s4] ss:$0 sm:$0xff] }
  0x2a   :  { %255 = vmatprep.subr.bf16.mxu0 %v476_v5 }
  0x2d   :  { %256 = vmatpush1.bf16.msra.mxu0 %v447_v18 }
  0x2e   :  { %257 = vmatprep.subr.bf16.mxu0 %v476_v5 }
  0x31   :  { %258 = vmatpush1.bf16.msra.mxu0 %v448_v19 }
  0x81   :  { %v51_v22 = vpop.permute.xlu1 %50  ;;  %v79_v23 = vpop.permute.xlu0 %78 }
  0x82   :  { %vm62_vm1 = vcmp.eq.s32.totalorder %v28_v24, %v51_v22  ;;  %vm90_vm2 = vcmp.eq.s32.totalorder %v28_v24, %v79_v23  ;;  %vm61_vm12 = vcmp.eq.s32.totalorder %v560_v21, %v51_v22 }
  0x85   :  { %v54_v25 = vpop.permute.xlu1 %53 }
  0x86   :  { %v31_v26 = vpop.permute.xlu0 %30  ;;  %vm63_vm4 = vcmp.eq.s32.totalorder %v560_v21, %v54_v25  ;;  %vm64_vm9 = vcmp.eq.s32.totalorder %v28_v24, %v54_v25 }
  0x87   :  { %vm42_vm0 = vcmp.eq.s32.totalorder %v28_v24, %v31_v26  ;;  %vm41_vm5 = vcmp.eq.s32.totalorder %v560_v21, %v31_v26 }
  0x88   :  { %vm70_vm3 = vmor %vm42_vm0, %vm62_vm1  ;;  %vm89_vm0 = vcmp.eq.s32.totalorder %v560_v21, %v79_v23 }
  0x89   :  { %vm98_vm8 = vmor %vm70_vm3, %vm90_vm2  ;;  %vm620_vm3 = vcmask 523264  }
  0x8a   :  { %v34_v27 = vpop.permute.xlu0 %33  ;;  %v82_v28 = vpop.permute.xlu1 %81  ;;  %vm69_vm15 = vmor %vm41_vm5, %vm61_vm12  ;;  %v385_v30 = vsel %vm98_vm8, 1.0, %v477_v11 }
  0x8b   :  { %vm43_vm6 = vcmp.eq.s32.totalorder %v560_v21, %v34_v27  ;;  %vm44_vm7 = vcmp.eq.s32.totalorder %v28_v24, %v34_v27  ;;  %vm92_vm11 = vcmp.eq.s32.totalorder %v28_v24, %v82_v28  ;;  %vm91_vm14 = vcmp.eq.s32.totalorder %v560_v21, %v82_v28 }
  0x8c   :  { %vm71_vm10 = vmor %vm43_vm6, %vm63_vm4 }
  0x8d   :  { %vm72_vm13 = vmor %vm44_vm7, %vm64_vm9 }
  0x8e   :  { %vm100_vm1 = vmor %vm72_vm13, %vm92_vm11  ;;  %v40_v32 = vpop.permute.xlu0 %39 }
  0x8f   :  { %v37_v29 = vpop.permute.xlu1 %36  ;;  %vm99_vm2 = vmor %vm71_vm10, %vm91_vm14  ;;  %v387_v31 = vsel %vm100_vm1, 1.0, %v477_v11  ;;  %vm48_vm1 = vcmp.eq.s32.totalorder %v28_v24, %v40_v32 }
  0x90   :  { %v122_v33 = vpack.c.bf16 %v387_v31, %v385_v30  ;;  %vm97_vm4 = vmor %vm69_vm15, %vm89_vm0  ;;  %vm46_vm7 = vcmp.eq.s32.totalorder %v28_v24, %v37_v29  ;;  %vm45_vm11 = vcmp.eq.s32.totalorder %v560_v21, %v37_v29  ;;  %vm47_vm15 = vcmp.eq.s32.totalorder %v560_v21, %v40_v32 }
  0x91   :  { %vm406_vm6 = vmpackc.low %vm99_vm2, %vm97_vm4 }
  0x92   :  { %405 = vmatprep.mubr.msk.bf16.mxu0 %vm620_vm3, %v122_v33 }
  0x93   :  { %407 = vmatmul.mubr.msk.bf16.vlgmr.msra.gmra.mrb[0].mxu0 %vm406_vm6, %v478_v34  ;;  %v85_v36 = vpop.permute.xlu0 %84 }
  0x94   :  { %v57_v35 = vpop.permute.xlu1 %56  ;;  %vm94_vm8 = vcmp.eq.s32.totalorder %v28_v24, %v85_v36 }
  0x95   :  { %vm66_vm5 = vcmp.eq.s32.totalorder %v28_v24, %v57_v35  ;;  %vm65_vm9 = vcmp.eq.s32.totalorder %v560_v21, %v57_v35 }
  0x96   :  { %vm74_vm10 = vmor %vm46_vm7, %vm66_vm5  ;;  %vm93_vm7 = vcmp.eq.s32.totalorder %v560_v21, %v85_v36 }
  0x97   :  { %vm575_vm13 = vmor %vm45_vm11, %vm65_vm9 }
  0x98   :  { %v60_v37 = vpop.permute.xlu1 %59  ;;  %vm102_vm0 = vmor %vm74_vm10, %vm94_vm8  ;;  %vm623_vm8 = vcmask 523264  }
  0x99   :  { %vm67_vm12 = vcmp.eq.s32.totalorder %v560_v21, %v60_v37  ;;  %vm68_vm14 = vcmp.eq.s32.totalorder %v28_v24, %v60_v37  ;;  %v389_v40 = vsel %vm102_vm0, 1.0, %v477_v11  ;;  %vm101_vm11 = vmor %vm575_vm13, %vm93_vm7  ;;  %vm307_vm13 = vcmask 1040384  }
  0x9a   :  { %vm75_vm2 = vmor %vm47_vm15, %vm67_vm12  ;;  %vm479_vm12 = vmmov 0  }
  0x9b   :  { %vm76_vm5 = vmor %vm48_vm1, %vm68_vm14  ;;  %418 = vmatprep.mubr.msk.bf16.mxu1 %vm479_vm12, %v477_v11  ;;  %vm368_vm14 = vcmask 58368  }
  0x9d   :  { %v88_v39 = vpop.permute.xlu1 %87 }
  0x9e   :  { %vm95_vm4 = vcmp.eq.s32.totalorder %v560_v21, %v88_v39  ;;  %vm96_vm6 = vcmp.eq.s32.totalorder %v28_v24, %v88_v39 }
  0x9f   :  { %vm104_vm3 = vmor %vm76_vm5, %vm96_vm6 }
  0xa0   :  { %vm103_vm9 = vmor %vm75_vm2, %vm95_vm4  ;;  %v391_v41 = vsel %vm104_vm3, 1.0, %v477_v11  ;;  %vm288_vm3 = vcmask 130048  }
  0xa1   :  { %v124_v42 = vpack.c.bf16 %v391_v41, %v389_v40  ;;  %vm409_vm10 = vmpackc.low %vm103_vm9, %vm101_vm11 }
  0xa3   :  { %408 = vmatprep.mubr.msk.bf16.mxu0 %vm623_vm8, %v124_v42 }
  0xa4   :  { %410 = vmatmul.mubr.msk.bf16.gmra.mrb[4].mxu0 %vm409_vm10, %v478_v34 }
 0x166   :  { %v269_v45 = vpop.f32.mrb[0].mxu0 }
 0x167   :  { %v270_v46 = vadd.f32 %v392_v44, %v269_v45  ;;  %v271_v47 = vpop.f32.mrb[1].mxu0 }
 0x168   :  { %v272_v48 = vpop.f32.mrb[2].mxu0 }
 0x169   :  { %v284_v49 = vmax.f32 %v270_v46, 0.0  ;;  %v273_v50 = vadd.f32 %v392_v44, %v272_v48  ;;  %v274_v51 = vpop.f32.mrb[3].mxu0 }
 0x16b   :  { %v285_v52 = vmax.f32 %v273_v50, 0.0  ;;  %v289_v53 = vsel %vm288_vm3, %v284_v49, -inf }
 0x16d   :  { %v290_v54 = vsel %vm288_vm3, %v285_v52, -inf }
 0x16e   :  { %v291_v55 = vmax.f32 %v289_v53, %v290_v54 }
 0x170   :  { %v292_v56 = vrot.slane %v291_v55, 4 }
 0x172   :  { %v293_v0 = vmax.f32 %v291_v55, %v292_v56 }
 0x174   :  { %v294_v4 = vrot.slane %v293_v0, 2 }
 0x176   :  { %v295_v7 = vmax.f32 %v293_v0, %v294_v4 }
 0x177   :  { %v277_v57 = vpop.f32.mrb[4].mxu0 }
 0x178   :  { %v278_v58 = vadd.f32 %v392_v44, %v277_v57  ;;  %v279_v59 = vpop.f32.mrb[5].mxu0  ;;  %v296_v10 = vrot.slane %v295_v7, 1 }
 0x179   :  { %v280_v60 = vpop.f32.mrb[6].mxu0 }
 0x17a   :  { %v286_v61 = vmax.f32 %v278_v58, 0.0  ;;  %v281_v62 = vadd.f32 %v392_v44, %v280_v60  ;;  %v282_v63 = vpop.f32.mrb[7].mxu0  ;;  %v297_v13 = vmax.f32 %v295_v7, %v296_v10 }
 0x17c   :  { %v287_v1 = vmax.f32 %v281_v62, 0.0  ;;  %v298_v2 = vsel %vm288_vm3, %v286_v61, -inf }
 0x17e   :  { %v299_v3 = vsel %vm288_vm3, %v287_v1, -inf }
 0x17f   :  { %v300_v5 = vmax.f32 %v298_v2, %v299_v3 }
 0x181   :  { %v301_v6 = vrot.slane %v300_v5, 4 }
 0x183   :  { %v302_v8 = vmax.f32 %v300_v5, %v301_v6 }
 0x185   :  { %v303_v9 = vrot.slane %v302_v8, 2 }
 0x187   :  { %v304_v11 = vmax.f32 %v302_v8, %v303_v9 }
 0x189   :  { %v305_v12 = vrot.slane %v304_v11, 1 }
 0x18b   :  { %v306_v14 = vmax.f32 %v304_v11, %v305_v12 }
 0x18d   :  { %v308_v15 = vsel %vm307_vm13, %v297_v13, %v306_v14 }
 0x18e   :  { %v309_v16 = vpack.c.bf16 %v308_v15, %v308_v15 }
 0x190   :  { %419 = vmatmul.mubr.msk.bf16.vlgmr.msra.gmra.mrb[0].mxu1 %vm288_vm3, %v309_v16 }
 0x263   :  { %v362_v18 = vpop.f32.mrb[0].mxu1 }
 0x264   :  { %v363_v19 = vadd.f32 %v411_v17, %v362_v18  ;;  %v420_v20 = vpop.f32.mrb[1].mxu1 }
 0x265   :  { %v365_v21 = vpop.f32.mrb[2].mxu1 }
 0x266   :  { %v421_v22 = vpop.f32.mrb[3].mxu1  ;;  %369 = vst.msk [vmem:[#allocation2] sm:$0x3] %vm368_vm14, %v363_v19 }
 0x267   :  { %461 = shalt.err (!%p458_p4)
}
 0x268   :  { %s462_s4 = scalar_lea.hbm %s619_s5, 32 }
 0x269   :  { %p463_p5 = scmp.ne.s32.totalorder %s619_s5, %s462_s4  ;;  %p466_p6 = scmp.lt.u32.totalorder %s462_s4, %s619_s5 }
 0x26b   :  { %p468_p7 = pnand %p466_p6, %p463_p5 }
 0x26d   :  { %471 = shalt.err (!%p468_p7)
}
 0x26e   :  { %379 = dma.vmem_to_hbm [thread:$0]  %s377_s28, 32, %s619_s5, [#allocation3]  }
 0x26f   :  { %472 = dma.done.wait [#allocation3], 32  }
 0x270   :  { %473 = vsyncadd [#allocation3], 4294967264 }
 0x271   :  { %383 = vsyncpa [#allocation3], 1 }

</bundles_post_ra>
